<compile_context>
chip_gen: v6e
topology: v6e:2x2x1
jax: 0.10.0
libtpu: 0.0.40
codegen_flags: <defaults>
</compile_context>

<pallas_src>
import jax
import jax.numpy as jnp
from jax import lax
from jax.experimental import pallas as pl
from jax.experimental.pallas import tpu as pltpu

_LANE = 128
_SUBLANE = 8


def _round_up(x, m):
    return ((x + m - 1) // m) * m


def _mask_attention_kernel(q_ref, c_ref, o_ref):
    # q_ref: (1, Lqp, D) -- same block for every Lc tile of this batch elem
    # c_ref: (1, Tlc, D) -- one Lc tile of context
    # o_ref: (1, Tlc, D)
    q = q_ref[0]                                   # (Lqp, D)
    c = c_ref[0]                                   # (Tlc, D)

    # scores = context @ query^T, contracting directly on D (no explicit
    # transpose of q -> no XLU vxpose / extra VMEM temp).
    scores = lax.dot_general(
        c, q,
        dimension_numbers=(((1,), (1,)), ((), ())),
        preferred_element_type=jnp.float32,
    )                                              # (Tlc, Lqp), f32

    neg_inf = jnp.float32(-jnp.inf)
    # torch.where(attention == 0, -inf, attention).  Padded query rows give
    # exact-zero score columns -> masked -> contribute nothing below.
    masked = jnp.where(scores == jnp.float32(0.0), neg_inf, scores)

    # Softmax over the last axis with torch's NaN-row (all-masked row) -> 0.
    rowmax = jnp.max(masked, axis=-1, keepdims=True)          # (Tlc, 1)
    row_valid = rowmax != neg_inf                              # (Tlc, 1)
    rowmax_safe = jnp.where(row_valid, rowmax, jnp.float32(0.0))
    e = jnp.exp(masked - rowmax_safe)                          # exp(-inf) -> 0
    denom = jnp.sum(e, axis=-1, keepdims=True)                 # (Tlc, 1)
    # Exact reciprocal on the narrow denom column (EUP) + a wide VPU multiply.
    # Fully-masked rows: denom=0 -> inf -> 0*inf = NaN, selected away by the
    # row_valid where which must stay strictly AFTER this multiply.
    attn = e * pl.reciprocal(denom, approx=False)
    attn = jnp.where(row_valid, attn, jnp.float32(0.0))        # final_attention

    # context_vec = final_attention @ query (padded attn cols are 0, padded
    # q rows are 0 -> exact).
    out = jnp.dot(attn, q, preferred_element_type=jnp.float32)
    o_ref[0] = out.astype(o_ref.dtype)


def _choose_tile_lc(B, Lc, Lqp, D, itemsize, budget_bytes):
    """VMEM- and megacore-aware Lc tile size."""
    def est(t):
        # 2x double-buffered context-in + out + q blocks, plus ~3 f32
        # (tlc, Lqp) softmax temporaries.
        blocks = 2 * (t * D + t * D + Lqp * D) * itemsize
        temps = 3 * t * Lqp * 4
        return blocks + temps

    t = _round_up(min(2048, _round_up(Lc, _SUBLANE)), _SUBLANE)
    while t > _SUBLANE and est(t) > budget_bytes:
        t = _round_up(max(t // 2, _SUBLANE), _SUBLANE)

    # Ensure >= 2 parallel grid blocks when possible so v7x's two TensorCores
    # (and megacore sharding in general) both get work.
    if B * pl.cdiv(Lc, t) < 2 and Lc > _SUBLANE:
        t = _round_up(pl.cdiv(Lc, 2), _SUBLANE)
    return max(t, _SUBLANE)


def mask_attention(query, context, *, vmem_budget_bytes=24 * 1024 * 1024):
    """query: (B, Lq, D), context: (B, Lc, D) -> (B, Lc, D)."""
    B, Lq, D = query.shape
    Bc, Lc, Dc = context.shape
    assert Bc == B and Dc == D

    # Pad only the (tiny) query: Lq -> multiple of 128 for lane-dense
    # (Tlc, Lq) intermediates and MXU operands.  Zero-row padding is exact
    # (see kernel comments).  context / output stay unpadded in HBM.
    Lqp = _round_up(Lq, _LANE)
    q = query
    if Lqp != Lq:
        q = jnp.pad(q, ((0, 0), (0, Lqp - Lq), (0, 0)))

    itemsize = jnp.dtype(query.dtype).itemsize
    tlc = _choose_tile_lc(B, Lc, Lqp, D, itemsize, vmem_budget_bytes)
    grid = (B, pl.cdiv(Lc, tlc))
    # NOTE: for very large D one could add an innermost "arbitrary"
    # D-contraction grid axis with a VMEM scores accumulator (mask/softmax in
    # the final k step); not needed at these sizes.

    cost = pl.CostEstimate(
        flops=4 * B * Lc * Lqp * D,                   # two matmuls
        transcendentals=B * Lc * (Lqp + 1),           # exp + reciprocal
        bytes_accessed=(q.size + context.size + B * Lc * D) * itemsize,
    )

    return pl.pallas_call(
        _mask_attention_kernel,
        out_shape=jax.ShapeDtypeStruct((B, Lc, D), query.dtype),
        grid_spec=pltpu.PrefetchScalarGridSpec(
            num_scalar_prefetch=0,
            grid=grid,
            in_specs=[
                # query: block index constant along the Lc-tile axis, so it is
                # not re-DMA'd between consecutive Lc steps of a batch.
                pl.BlockSpec((1, Lqp, D), lambda b, l: (b, 0, 0)),
                pl.BlockSpec((1, tlc, D), lambda b, l: (b, l, 0)),
            ],
            out_specs=pl.BlockSpec((1, tlc, D), lambda b, l: (b, l, 0)),
        ),
        compiler_params=pltpu.CompilerParams(
            dimension_semantics=("parallel", "parallel"),
            vmem_limit_bytes=32 * 1024 * 1024,
        ),
        cost_estimate=cost,
    )(q, context)


def _reference(query, context):
    # Pure-JAX reference mirroring the PyTorch module semantics.
    scores = jnp.einsum("bld,bqd->blq", context, query)
    masked = jnp.where(scores == 0.0, -jnp.inf, scores)
    attn = jax.nn.softmax(masked, axis=-1)
    attn = jnp.where(jnp.isnan(attn), 0.0, attn)
    return jnp.einsum("blq,bqd->bld", attn, query)


if __name__ == "__main__":
    key = jax.random.PRNGKey(0)
    kq, kc = jax.random.split(key)

    B, Lq, Lc, D = 2, 8, 16, 32
    query = jax.random.normal(kq, (B, Lq, D), dtype=jnp.float32)
    context = jax.random.normal(kc, (B, Lc, D), dtype=jnp.float32)
    # Exercise both masking paths: an all-zero context row (-> fully masked
    # row -> NaN -> zeroed output row) and an all-zero query row (-> one
    # masked column in every score row).
    context = context.at[:, 0, :].set(0.0)
    query = query.at[:, 0, :].set(0.0)

    out = jax.block_until_ready(mask_attention(query, context))
    ref = _reference(query, context)

    assert out.shape == (B, Lc, D)
    # All math is f32 (exact reciprocal); remaining differences are MXU f32
    # accumulation-order effects, well under the tolerance.
    max_err = float(jnp.max(jnp.abs(out - ref)))
    assert jnp.allclose(out, ref, atol=2e-3, rtol=2e-3), max_err

    print("KERNEL_OK")
</pallas_src>

<mosaic_0001>
module attributes {stable_mosaic.version = 11 : i64} {
  func.func @_mask_attention_kernel(%arg0: i32, %arg1: i32, %arg2: memref<1x128x32xf32, #tpu.memory_space<vmem>>, %arg3: memref<1x16x32xf32, #tpu.memory_space<vmem>>, %arg4: memref<1x16x32xf32, #tpu.memory_space<vmem>>) attributes {dimension_semantics = [#tpu.dimension_semantics<parallel>, #tpu.dimension_semantics<parallel>], iteration_bounds = array<i64: 2, 1>, scalar_prefetch = 0 : i64, scratch_operands = 0 : i64, tpu.core_type = #tpu.core_type<tc>, window_params = [{transform_indices = @transform_0, window_bounds = array<i64: 1, 128, 32>}, {transform_indices = @transform_1, window_bounds = array<i64: 1, 16, 32>}, {transform_indices = @transform_2, window_bounds = array<i64: 1, 16, 32>}]} {
    %c0 = arith.constant 0 : index
    %c0_0 = arith.constant 0 : index
    %c0_1 = arith.constant 0 : index
    %0 = vector.load %arg2[%c0, %c0_0, %c0_1] : memref<1x128x32xf32, #tpu.memory_space<vmem>>, vector<1x128x32xf32>
    %1 = vector.shape_cast %0 : vector<1x128x32xf32> to vector<128x32xf32>
    %c0_2 = arith.constant 0 : index
    %c0_3 = arith.constant 0 : index
    %c0_4 = arith.constant 0 : index
    %2 = vector.load %arg3[%c0_2, %c0_3, %c0_4] : memref<1x16x32xf32, #tpu.memory_space<vmem>>, vector<1x16x32xf32>
    %3 = vector.shape_cast %2 : vector<1x16x32xf32> to vector<16x32xf32>
    %cst = arith.constant dense<0.000000e+00> : vector<16x128xf32>
    %4 = tpu.matmul %3, %1, %cst {dimension_numbers = #tpu.dot_dimension_numbers<[1], [1], [0], [0], [0, 0, 1, 0], [], []>} : vector<16x32xf32>, vector<128x32xf32>, vector<16x128xf32> -> vector<16x128xf32>
    %cst_5 = arith.constant 0.000000e+00 : f32
    %5 = vector.broadcast %cst_5 : f32 to vector<16x128xf32>
    %6 = arith.cmpf oeq, %4, %5 : vector<16x128xf32>
    %cst_6 = arith.constant 0xFF800000 : f32
    %7 = vector.broadcast %cst_6 : f32 to vector<16x128xf32>
    %8 = arith.select %6, %7, %4 : vector<16x128xi1>, vector<16x128xf32>
    %cst_7 = arith.constant dense<0xFF800000> : vector<16xf32>
    %9 = vector.multi_reduction <maximumf>, %8, %cst_7 [1] : vector<16x128xf32> to vector<16xf32>
    %10 = vector.shape_cast %9 : vector<16xf32> to vector<16x1xf32>
    %cst_8 = arith.constant 0xFF800000 : f32
    %11 = vector.broadcast %cst_8 : f32 to vector<16x1xf32>
    %12 = arith.cmpf one, %10, %11 : vector<16x1xf32>
    %cst_9 = arith.constant 0.000000e+00 : f32
    %13 = vector.broadcast %cst_9 : f32 to vector<16x1xf32>
    %14 = arith.select %12, %10, %13 : vector<16x1xi1>, vector<16x1xf32>
    %15 = vector.broadcast %14 : vector<16x1xf32> to vector<16x128xf32>
    %16 = arith.subf %8, %15 : vector<16x128xf32>
    %17 = math.exp %16 : vector<16x128xf32>
    %cst_10 = arith.constant dense<0.000000e+00> : vector<16xf32>
    %18 = vector.multi_reduction <add>, %17, %cst_10 [1] : vector<16x128xf32> to vector<16xf32>
    %19 = vector.shape_cast %18 : vector<16xf32> to vector<16x1xf32>
    %20 = tpu.reciprocal %19 : vector<16x1xf32> -> vector<16x1xf32>
    %21 = vector.broadcast %20 : vector<16x1xf32> to vector<16x128xf32>
    %22 = arith.mulf %17, %21 : vector<16x128xf32>
    %cst_11 = arith.constant 0.000000e+00 : f32
    %23 = vector.shape_cast %12 : vector<16x1xi1> to vector<16x1xi1>
    %24 = vector.broadcast %23 : vector<16x1xi1> to vector<16x128xi1>
    %25 = vector.broadcast %cst_11 : f32 to vector<16x128xf32>
    %26 = arith.select %24, %22, %25 : vector<16x128xi1>, vector<16x128xf32>
    %cst_12 = arith.constant dense<0.000000e+00> : vector<16x32xf32>
    %27 = tpu.matmul %26, %1, %cst_12 {dimension_numbers = #tpu.dot_dimension_numbers<[1], [0], [0], [1], [0, 0, 1, 1], [], []>} : vector<16x128xf32>, vector<128x32xf32>, vector<16x32xf32> -> vector<16x32xf32>
    %c0_13 = arith.constant 0 : index
    %c0_14 = arith.constant 0 : index
    %c0_15 = arith.constant 0 : index
    %28 = vector.load %arg4[%c0_13, %c0_14, %c0_15] : memref<1x16x32xf32, #tpu.memory_space<vmem>>, vector<1x16x32xf32>
    %29 = vector.shape_cast %28 : vector<1x16x32xf32> to vector<16x32xf32>
    %30 = vector.shape_cast %27 : vector<16x32xf32> to vector<1x16x32xf32>
    tpu.vector_store %arg4[%c0_13, %c0_14, %c0_15], %30 {strides = array<i32>} : memref<1x16x32xf32, #tpu.memory_space<vmem>>, vector<1x16x32xf32>,
    return
  }
  func.func @transform_0(%arg0: i32, %arg1: i32) -> (i32, i32, i32) {
    %c0_i32 = arith.constant 0 : i32
    %c0_i32_0 = arith.constant 0 : i32
    %c0_i32_1 = arith.constant 0 : i32
    return %arg0, %c0_i32, %c0_i32_0 : i32, i32, i32
  }
  func.func @transform_1(%arg0: i32, %arg1: i32) -> (i32, i32, i32) {
    %c0_i32 = arith.constant 0 : i32
    %c0_i32_0 = arith.constant 0 : i32
    return %arg0, %arg1, %c0_i32 : i32, i32, i32
  }
  func.func @transform_2(%arg0: i32, %arg1: i32) -> (i32, i32, i32) {
    %c0_i32 = arith.constant 0 : i32
    %c0_i32_0 = arith.constant 0 : i32
    return %arg0, %arg1, %c0_i32 : i32, i32, i32
  }
}

</mosaic_0001>

<bundles_post_ra>
// kernel: tpu_custom_call.1
= control target key start
LH: loop header
LB: loop body
LE: loop exit
PB: predicated region body
PF: predicated region fallthrough
CT: control target
= control target key end

     0   :  { %7 = vsyncpa [#allocation3], 0  ;;  %s1041_s0 = inlined_call_operand.vmem [shape: f32[2,128,32], index: 0, kind: input, shape index: {}]   ;;  %s1042_s1 = inlined_call_operand.vmem [shape: f32[2,16,32], index: 1, kind: input, shape index: {}]   ;;  %s1043_s2 = inlined_call_operand.hbm [shape: f32[2,16,32], index: 2, kind: output, shape index: {}]  }
   0x1   :  { %9 = vsyncpa [#allocation3 + $0x1], 0  ;;  %s862_s9 = smov 0   ;;  %s864_s10 = smov 0  }
   0x2   :  { %s866_s11 = smov 0   ;;  %s868_s12 = smov 0  }
   0x3   :  { %s870_s13 = smov 0   ;;  %s872_s14 = smov 0  }
   0x4 LB: > { %s557_s15 = sadd.s32 4294967295, %s842_s14   ;;  %s558_s16 = sadd.s32 4294967294, %s842_s14   ;;  %s842_s14 = sphi %s872_s14, %s15_s14   ;;  %s838_s13 = sphi %s870_s13, %s1050_s13   ;;  %s834_s12 = sphi %s868_s12, %s1049_s12   ;;  %s830_s11 = sphi %s866_s11, %s1048_s11   ;;  %s826_s10 = sphi %s864_s10, %s1047_s10   ;;  %s822_s9 = sphi %s862_s9, %s1046_s9  }
   0x5   : > { %s27_s17 = sadd.s32 1, %s838_s13  ;;  %s90_s18 = sadd.s32 1, %s830_s11 }
   0x6   : > { %p29_p0 = scmp.ge.s32.totalorder %s27_s17, 2  ;;  %p100_p1 = scmp.ne.s32.totalorder %s830_s11, %s826_s10 }
   0x7   : > { %p101_p2 = scmp.eq.s32.totalorder %s557_s15, 1  ;;  %p106_p3 = scmp.ne.s32.totalorder %s826_s10, %s822_s9 }
   0x8   : > { %s1052_s17 = smov (%p29_p0, %s27_s17), 0  ;;  %p107_p5 = scmp.eq.s32.totalorder %s558_s16, 1 }
   0x9   : > { %p902_p4 = por %p101_p2, %p100_p1  ;;  %s85_s20 = ssub.s32 %s838_s13, %s1052_s17 }
   0xa   : > { %p561_p6 = scmp.ge.s32.totalorder %s842_s14, 1  ;;  %p88_p7 = scmp.eq.s32.totalorder %s85_s20, 0 }
   0xb   : > { %p909_p8 = por %p107_p5, %p106_p3  ;;  %p146_p9 = scmp.lt.s32.totalorder %s842_s14, 3 }
   0xc   : > { %s915_s22 = scalar_select %p88_p7, %s830_s11, %s90_s18  }
   0xd   : > { %p147_p10 = pnand %p561_p6, %p146_p9 }
   0xe   : > { %p177_p11 = scmp.lt.s32.totalorder (!%p147_p10), %s834_s12, 1  ;;  %s174_s4 = sand.u32 (!%p147_p10), 1, %s826_s10  }
   0xf   : > { %150 = sbr.rel (%p147_p10) target bundleno = 811 (0x32b), region = 28  ;;  %s562_s5 = sshll.u32 (!%p147_p10), %s174_s4, 4 }
  0x10   : > { %s176_s6 = scalar_lea.vmem (!%p147_p10), [#allocation2], %s562_s5  ;;  %s594_s8 = sshll.u32 (!%p147_p10), %s834_s12, 8 }
  0x11   : > { %s466_s7 = sshll.u32 (!%p147_p10), %s176_s6, 4  ;;  %s992_s18 = scalar_lea.hbm (!%p147_p10), %s1043_s2, %s594_s8  ;;  %s987_s7 = int_to_ptr.vmem [resolvable:$true] %s466_s7 }
  0x12   : > { %s996_s20 = scalar_lea.sflag (!%p147_p10), [#allocation3], %s174_s4 }
  0x14   : > { %s178_s23 = scalar_select %p177_p11, %s834_s12, 1  ;;  %vm211_vm0 = vcmask 261120  }
  0x15   : > { %s844_s12 = smov [#allocation2]  }
  0x16   : > { %s592_s24 = sshll.u32 %s178_s23, 7  ;;  %s593_s28 = sshll.u32 %s178_s23, 4 }
  0x17   : > { %s922_s27 = scalar_lea.vmem %s1041_s0, %s592_s24  ;;  %s931_s3 = scalar_lea.vmem %s1042_s1, %s593_s28 }
  0x18   : > { %v208_v0 = vld [vmem:[%s922_s27 + $0x78] sm:$0xff]  ;;  %v207_v1 = vld [vmem:[%s922_s27 + $0x70] sm:$0xff]  ;;  %v206_v2 = vld [vmem:[%s922_s27 + $0x68] sm:$0xff]  ;;  %s766_s23 = scalar_lea.vmem %s987_s7, 256  ;;  %s770_s24 = sshll.u32 %s844_s12, 4  ;;  %s771_s24 = int_to_ptr.vmem [resolvable:$false] %s770_s24 }
  0x19   : > { %631 = vmatprep.subr.msk.mxu0 %vm211_vm0, %v208_v0  ;;  %666 = vmatprep.subr.mxu1 %v208_v0  ;;  %v209_v3 = vld [vmem:[%s931_s3] sm:$0xff]  ;;  %v204_v5 = vld [vmem:[%s922_s27 + $0x58] sm:$0xff]  ;;  %v203_v6 = vld [vmem:[%s922_s27 + $0x50] sm:$0xff]  ;;  %p767_p12 = scmp.ne.s32.totalorder %s987_s7, %s766_s23  ;;  %s772_s25 = scalar_lea.vmem %s771_s24, 512 }
  0x1a   : > { %632 = vmatpush3.xpose.msk.msra.mxu0 %vm211_vm0, %v208_v0  ;;  %667 = vmatpush3.msra.mxu1 %v208_v0  ;;  %v205_v4 = vld [vmem:[%s922_s27 + $0x60] sm:$0xff]  ;;  %v202_v7 = vld [vmem:[%s922_s27 + $0x48] sm:$0xff]  ;;  %v200_v9 = vld [vmem:[%s922_s27 + $0x38] sm:$0xff]  ;;  %p773_p1 = scmp.lt.s32.totalorder %s987_s7, %s771_s24  ;;  %p774_p2 = scmp.lt.s32.totalorder %s772_s25, %s766_s23 }
  0x1b   : > { %633 = vmatprep.subr.msk.mxu0 %vm211_vm0, %v207_v1  ;;  %668 = vmatprep.subr.mxu1 %v207_v1  ;;  %v201_v8 = vld [vmem:[%s922_s27 + $0x40] sm:$0xff]  ;;  %v199_v10 = vld [vmem:[%s922_s27 + $0x30] sm:$0xff]  ;;  %v198_v11 = vld [vmem:[%s922_s27 + $0x28] sm:$0xff]  ;;  %p768_p13 = pnand %p767_p12, %p902_p4 }
  0x1c   : > { %669 = vmatpush3.msra.mxu1 %v207_v1  ;;  %663 = vmatprep.mubr.msk.f32.mxu0 %vm211_vm0, %v209_v3  ;;  %v197_v12 = vld [vmem:[%s922_s27 + $0x20] sm:$0xff]  ;;  %v196_v13 = vld [vmem:[%s922_s27 + $0x18] sm:$0xff]  ;;  %v195_v14 = vld [vmem:[%s922_s27 + $0x10] sm:$0xff]  ;;  %p775_p3 = por %p774_p2, %p773_p1 }
  0x1d   : > { %670 = vmatprep.subr.mxu1 %v206_v2  ;;  %v194_v15 = vld [vmem:[%s922_s27 + $0x8] sm:$0xff]  ;;  %v193_v16 = vld [vmem:[%s922_s27] sm:$0xff]  ;;  %p769_p0 = pneg %p768_p13 }
  0x1e   : > { %634 = vmatpush3.xpose.msk.msra.mxu0 %vm211_vm0, %v207_v1  ;;  %671 = vmatpush3.msra.mxu1 %v206_v2  ;;  %v210_v17 = vld [vmem:[%s931_s3 + $0x8] sm:$0xff] }
  0x1f   : > { %635 = vmatprep.subr.msk.mxu0 %vm211_vm0, %v206_v2  ;;  %672 = vmatprep.subr.mxu1 %v205_v4  ;;  %p776_p5 = pnand %p775_p3, %p769_p0 }
  0x20   : > { %673 = vmatpush3.msra.mxu1 %v205_v4 }
  0x21   : > { %674 = vmatprep.subr.mxu1 %v204_v5 }
  0x22   : > { %636 = vmatpush3.xpose.msk.msra.mxu0 %vm211_vm0, %v206_v2  ;;  %675 = vmatpush3.msra.mxu1 %v204_v5 }
  0x23   : > { %637 = vmatprep.subr.msk.mxu0 %vm211_vm0, %v205_v4  ;;  %676 = vmatprep.subr.mxu1 %v203_v6 }
  0x24   : > { %677 = vmatpush3.msra.mxu1 %v203_v6 }
  0x25   : > { %678 = vmatprep.subr.mxu1 %v202_v7 }
  0x26   : > { %638 = vmatpush3.xpose.msk.msra.mxu0 %vm211_vm0, %v205_v4  ;;  %679 = vmatpush3.msra.mxu1 %v202_v7 }
  0x27   : > { %639 = vmatprep.subr.msk.mxu0 %vm211_vm0, %v204_v5  ;;  %680 = vmatprep.subr.mxu1 %v201_v8 }
  0x28   : > { %681 = vmatpush3.msra.mxu1 %v201_v8 }
  0x29   : > { %682 = vmatprep.subr.mxu1 %v200_v9 }
  0x2a   : > { %640 = vmatpush3.xpose.msk.msra.mxu0 %vm211_vm0, %v204_v5  ;;  %683 = vmatpush3.msra.mxu1 %v200_v9 }
  0x2b   : > { %641 = vmatprep.subr.msk.mxu0 %vm211_vm0, %v203_v6  ;;  %684 = vmatprep.subr.mxu1 %v199_v10 }
  0x2c   : > { %685 = vmatpush3.msra.mxu1 %v199_v10 }
  0x2d   : > { %686 = vmatprep.subr.mxu1 %v198_v11 }
  0x2e   : > { %642 = vmatpush3.xpose.msk.msra.mxu0 %vm211_vm0, %v203_v6  ;;  %687 = vmatpush3.msra.mxu1 %v198_v11 }
  0x2f   : > { %643 = vmatprep.subr.msk.mxu0 %vm211_vm0, %v202_v7  ;;  %688 = vmatprep.subr.mxu1 %v197_v12 }
  0x30   : > { %689 = vmatpush3.msra.mxu1 %v197_v12 }
  0x31   : > { %690 = vmatprep.subr.mxu1 %v196_v13 }
  0x32   : > { %644 = vmatpush3.xpose.msk.msra.mxu0 %vm211_vm0, %v202_v7  ;;  %691 = vmatpush3.msra.mxu1 %v196_v13 }
  0x33   : > { %645 = vmatprep.subr.msk.mxu0 %vm211_vm0, %v201_v8  ;;  %692 = vmatprep.subr.mxu1 %v195_v14 }
  0x34   : > { %693 = vmatpush3.msra.mxu1 %v195_v14 }
  0x35   : > { %694 = vmatprep.subr.mxu1 %v194_v15 }
  0x36   : > { %646 = vmatpush3.xpose.msk.msra.mxu0 %vm211_vm0, %v201_v8  ;;  %695 = vmatpush3.msra.mxu1 %v194_v15 }
  0x37   : > { %647 = vmatprep.subr.msk.mxu0 %vm211_vm0, %v200_v9  ;;  %696 = vmatprep.subr.mxu1 %v193_v16 }
  0x38   : > { %697 = vmatpush3.msra.mxu1 %v193_v16 }
  0x3a   : > { %648 = vmatpush3.xpose.msk.msra.mxu0 %vm211_vm0, %v200_v9 }
  0x3b   : > { %649 = vmatprep.subr.msk.mxu0 %vm211_vm0, %v199_v10 }
  0x3e   : > { %650 = vmatpush3.xpose.msk.msra.mxu0 %vm211_vm0, %v199_v10 }
  0x3f   : > { %651 = vmatprep.subr.msk.mxu0 %vm211_vm0, %v198_v11 }
  0x42   : > { %652 = vmatpush3.xpose.msk.msra.mxu0 %vm211_vm0, %v198_v11 }
  0x43   : > { %653 = vmatprep.subr.msk.mxu0 %vm211_vm0, %v197_v12 }
  0x46   : > { %654 = vmatpush3.xpose.msk.msra.mxu0 %vm211_vm0, %v197_v12 }
  0x47   : > { %655 = vmatprep.subr.msk.mxu0 %vm211_vm0, %v196_v13 }
  0x4a   : > { %656 = vmatpush3.xpose.msk.msra.mxu0 %vm211_vm0, %v196_v13 }
  0x4b   : > { %657 = vmatprep.subr.msk.mxu0 %vm211_vm0, %v195_v14 }
  0x4e   : > { %658 = vmatpush3.xpose.msk.msra.mxu0 %vm211_vm0, %v195_v14 }
  0x4f   : > { %659 = vmatprep.subr.msk.mxu0 %vm211_vm0, %v194_v15 }
  0x52   : > { %660 = vmatpush3.xpose.msk.msra.mxu0 %vm211_vm0, %v194_v15 }
  0x53   : > { %661 = vmatprep.subr.msk.mxu0 %vm211_vm0, %v193_v16 }
  0x56   : > { %662 = vmatpush3.xpose.msk.msra.mxu0 %vm211_vm0, %v193_v16 }
  0x59   : > { %664 = vmatmul.mubr.msk.f32.vlgmr.msra.gmra.mxu0 %vm211_vm0, %v210_v17 }
 0x119   : > { %v665_v18 = vpop.f32.mrf.mxu0 }
 0x11a   : > { %vm342_vm2 = vcmp.eq.f32.partialorder %v665_v18, 0.0 }
 0x11b   : > { %v332_v19 = vpop.f32.mrf.mxu0  ;;  %v344_v21 = vsel %vm342_vm2, -inf, %v665_v18 }
 0x11c   : > { %vm341_vm1 = vcmp.eq.f32.partialorder %v332_v19, 0.0 }
 0x11d   : > { %v343_v20 = vsel %vm341_vm1, -inf, %v332_v19 }
 0x11e   : > { %345 = vmax.xlane.f32.xlu0 %v343_v20 }
 0x122   : > { %347 = vmax.xlane.f32.xlu0 %v344_v21 }
 0x1a7   : > { %v346_v22 = vpop.xlane.xlu0 %345 }
 0x1a8   : > { %vm349_vm3 = vcmp.ne.f32.partialorder %v346_v22, -inf }
 0x1a9   : > { %v351_v23 = vsel %vm349_vm3, %v346_v22, 0.0 }
 0x1aa   : > { %v353_v24 = vsub.f32 %v343_v20, %v351_v23 }
 0x1ab   : > { %v348_v25 = vpop.xlane.xlu0 %347 }
 0x1ac   : > { %v355_v26 = vmul.f32 1.442695, %v353_v24  ;;  %vm350_vm4 = vcmp.ne.f32.partialorder %v348_v25, -inf }
 0x1ad   : > { %v352_v27 = vsel %vm350_vm4, %v348_v25, 0.0 }
 0x1ae   : > { %758 = vpow2.f32 %v355_v26  ;;  %v354_v28 = vsub.f32 %v344_v21, %v352_v27 }
 0x1b0   : > { %v357_v29 = vmul.f32 1.442695, %v354_v28 }
 0x1b2   : > { %760 = vpow2.f32 %v357_v29 }
 0x1bb   : > { %v759_v30 = vpop.eup %758 }
 0x1bc   : > { %359 = vadd.xlane.f32.xlu1 %v759_v30 }
 0x1bf   : > { %v761_v31 = vpop.eup %760 }
 0x1c0   : > { %361 = vadd.xlane.f32.xlu1 %v761_v31 }
 0x245   : > { %v360_v32 = vpop.xlane.xlu1 %359 }
 0x246   : > { %762 = vrcp.f32 %v360_v32 }
 0x249   : > { %v362_v33 = vpop.xlane.xlu1 %361 }
 0x24a   : > { %764 = vrcp.f32 %v362_v33 }
 0x253   : > { %v763_v34 = vpop.eup %762 }
 0x254   : > { %v365_v35 = vmul.f32 %v763_v34, %v759_v30 }
 0x256   : > { %698 = vmatprep.mubr.msk.f32.mxu1 %vm349_vm3, %v365_v35 }
 0x257   : > { %v765_v36 = vpop.eup %764 }
 0x258   : > { %v366_v37 = vmul.f32 %v765_v36, %v761_v31 }
 0x25a   : > { %699 = vmatmul.mubr.msk.f32.vlgmr.msra.gmra.mxu1 %vm350_vm4, %v366_v37 }
 0x31a   : > { %v700_v38 = vpop.f32.mrf.mxu1 }
 0x31b   : > { %449 = vst.msk [vmem:[%s176_s6 + $0x8] sm:$0xff] %vm211_vm0, %v700_v38 }
 0x31c   : > { %v439_v39 = vpop.f32.mrf.mxu1 }
 0x31d   : > { %448 = vst.msk [vmem:[%s176_s6] sm:$0xff] %vm211_vm0, %v439_v39 }
 0x31e   : > { %779 = shalt.err (!%p776_p5)
}
 0x31f   : > { %s780_s26 = scalar_lea.hbm %s992_s18, 256  ;;  %s784_s29 = scalar_lea.hbm %s1043_s2, 512 }
 0x320   : > { %p781_p6 = scmp.ne.s32.totalorder %s992_s18, %s780_s26  ;;  %p785_p10 = scmp.lt.s32.totalorder %s992_s18, %s1043_s2 }
 0x321   : > { %p786_p11 = scmp.lt.s32.totalorder %s784_s29, %s780_s26 }
 0x322   : > { %p782_p7 = pnand %p781_p6, %p902_p4 }
 0x323   : > { %p787_p12 = por %p786_p11, %p785_p10 }
 0x324   : > { %p783_p9 = pneg %p782_p7 }
 0x326   : > { %p788_p13 = pnand %p787_p12, %p783_p9 }
 0x328   : > { %791 = shalt.err (!%p788_p13)
}
 0x329   : > { %s845_s4 = smov 128   ;;  %s846_s5 = smov 8  }
 0x32a   : > { %701 = dma.vmem_to_hbm [thread:$0]  (%p902_p4), %s987_s7, 256, %s992_s18, %s996_s20, %s845_s4, %s845_s4, %s846_s5  }
 0x32b PF: > { %p707_p0 = scmp.ge.s32.totalorder %s842_s14, 2  ;;  %s481_s6 = sand.u32 1, %s822_s9  }
 0x32c   : > { %s482_s8 = scalar_lea.sflag [#allocation3], %s481_s6 }
 0x32d   : > { %p704_p1 = pnand %p707_p0, %p909_p8 }
 0x32f   : > { %p705_p2 = pneg %p704_p1 }
 0x331   : > { %817 = dma.done.wait (%p705_p2), %s482_s8, 256  }
 0x332   : > { %819 = vsyncadd (%p705_p2), %s482_s8, 4294967040  ;;  %s15_s14 = sadd.s32 1, %s842_s14   ;;  %s1046_s9 = smov %s826_s10 }
 0x333   : > { %p12_p3 = scmp.ge.s32.totalorder %s15_s14, 4   ;;  %s1047_s10 = smov %s830_s11 }
 0x334   : > { %s1048_s11 = smov %s915_s22  ;;  %s1049_s12 = smov %s838_s13 }
 0x335   : > { %s1050_s13 = smov %s1052_s17  ;;  %14 = sbr.rel (!%p12_p3) target bundleno = 4 (0x4), region = 66 }
 0x33a   :  { %487 = vsyncpa [#allocation3], 1 }
 0x33b   :  { %489 = vsyncpa [#allocation3 + $0x1], 1 }

</bundles_post_ra>
